<compile_context>
chip_gen: v6e
topology: v6e:2x2x1
jax: 0.10.0
libtpu: 0.0.40
codegen_flags: <defaults>
</compile_context>

<pallas_src>
import functools

import jax
import jax.numpy as jnp
from jax.experimental import pallas as pl
from jax.experimental.pallas import tpu as pltpu

_K_IN = 784        # real input features (28*28)
_H_PAD = 128       # padded width of every hidden / output layer
_N_OUT = 10        # real number of classes
_NEG_BIG = -1e30   # masks padded class lanes out of the softmax


def _mlp_kernel(x_ref, w1_ref, b1_ref, w2_ref, b2_ref, w3_ref, b3_ref,
                w4_ref, b4_ref, o_ref):
    # Fused 4-layer MLP + log_softmax for one batch tile.
    # x arrives as float32 straight from HBM; cast to bf16 on-chip for the MXU.
    x = x_ref[...].astype(jnp.bfloat16)                          # (bt, 784)

    h1 = jnp.tanh(
        jnp.dot(x, w1_ref[...], preferred_element_type=jnp.float32)
        + b1_ref[...])
    h2 = jnp.tanh(
        jnp.dot(h1.astype(jnp.bfloat16), w2_ref[...],
                preferred_element_type=jnp.float32) + b2_ref[...])
    h3 = jnp.tanh(
        jnp.dot(h2.astype(jnp.bfloat16), w3_ref[...],
                preferred_element_type=jnp.float32) + b3_ref[...])
    # b4 carries -1e30 in its padded class lanes (and the padded w4 columns are
    # zero), so those lanes vanish from the softmax with no explicit mask.
    h4 = (jnp.dot(h3.astype(jnp.bfloat16), w4_ref[...],
                  preferred_element_type=jnp.float32) + b4_ref[...])

    # Numerically stable log_softmax along dim=1, in float32.
    m = jnp.max(h4, axis=1, keepdims=True)
    shifted = h4 - m
    lse = jnp.log(jnp.sum(jnp.exp(shifted), axis=1, keepdims=True))
    o_ref[...] = (shifted - lse).astype(o_ref.dtype)


def _round_up(v, m):
    return (v + m - 1) // m * m


@functools.lru_cache(maxsize=None)
def _multi_tensorcore():
    # v7x has two TensorCores per chip; the batch grid axis (marked "parallel")
    # is the only thing sharded across them, so keep >= 2 grid steps there.
    try:
        return "7" in jax.devices()[0].device_kind
    except Exception:
        return False


@functools.partial(jax.jit, static_argnames=("batch_tile",))
def net1_forward(x, params, *, batch_tile=2048):
    """x: (B, 1, 28, 28) or (B, 784). Returns log-probabilities (B, 10) f32.

    Weights must be (in_features, out_features) -- i.e. torch Linear.weight.T
    -- and biases (1, out_features).
    """
    w1, b1, w2, b2, w3, b3, w4, b4 = params
    assert w1.shape == (_K_IN, 128) and b1.shape == (1, 128)
    assert w2.shape == (128, 64) and b2.shape == (1, 64)
    assert w3.shape == (64, 16) and b3.shape == (1, 16)
    assert w4.shape == (16, _N_OUT) and b4.shape == (1, _N_OUT)

    x2d = x.astype(jnp.float32).reshape(-1, _K_IN)   # == x.view(-1, 784), free
    B = x2d.shape[0]

    # ---- choose batch tile (multiple of 8); no HBM padding/copy of x --------
    tile = max(8, (min(batch_tile, _round_up(B, 8)) // 8) * 8)
    if _multi_tensorcore() and B >= 16 and pl.cdiv(B, tile) < 2:
        tile = _round_up(pl.cdiv(B, 2), 8)           # keep both v7x TCs busy
    grid = (pl.cdiv(B, tile),)

    # ---- pad the tiny weight/bias tensors to lane width (one-off, ~300 KB) --
    w1p = w1.astype(jnp.bfloat16)                                        # (784,128)
    w2p = jnp.pad(w2, ((0, 0), (0, _H_PAD - 64))).astype(jnp.bfloat16)   # (128,128)
    w3p = jnp.pad(w3, ((0, _H_PAD - 64), (0, _H_PAD - 16))).astype(jnp.bfloat16)
    w4p = jnp.pad(w4, ((0, _H_PAD - 16), (0, _H_PAD - _N_OUT))).astype(jnp.bfloat16)
    b1p = b1.astype(jnp.float32)
    b2p = jnp.pad(b2, ((0, 0), (0, _H_PAD - 64))).astype(jnp.float32)
    b3p = jnp.pad(b3, ((0, 0), (0, _H_PAD - 16))).astype(jnp.float32)
    b4p = jnp.pad(b4.astype(jnp.float32), ((0, 0), (0, _H_PAD - _N_OUT)),
                  constant_values=_NEG_BIG)

    # Parameters are loaded whole (block == full array); their index maps are
    # constant so they are DMA'd once and stay resident across the batch grid.
    # TODO(synk): pipeline_mode=pl.Buffered(1) on these specs would drop their
    # double buffer (~0.3 MiB VMEM); skipped since vmem_limit_bytes covers it.
    full = lambda shape: pl.BlockSpec(shape, lambda i: (0,) * len(shape))

    flops = 2 * B * (_K_IN * _H_PAD + 3 * _H_PAD * _H_PAD)
    transcendentals = B * (4 * _H_PAD + 1)           # 3x tanh + exp + log
    bytes_accessed = (x2d.size * 4 + w1p.size * 2 + 3 * _H_PAD * _H_PAD * 2
                      + 4 * _H_PAD * 4 + B * _H_PAD * 2)

    out = pl.pallas_call(
        _mlp_kernel,
        out_shape=jax.ShapeDtypeStruct((B, _H_PAD), jnp.bfloat16),
        grid_spec=pltpu.PrefetchScalarGridSpec(
            num_scalar_prefetch=0,
            grid=grid,
            in_specs=[
                pl.BlockSpec((tile, _K_IN), lambda i: (i, 0)),   # x tile (f32)
                full((_K_IN, _H_PAD)), full((1, _H_PAD)),        # fc1
                full((_H_PAD, _H_PAD)), full((1, _H_PAD)),       # fc2
                full((_H_PAD, _H_PAD)), full((1, _H_PAD)),       # fc3
                full((_H_PAD, _H_PAD)), full((1, _H_PAD)),       # fc4
            ],
            out_specs=pl.BlockSpec((tile, _H_PAD), lambda i: (i, 0)),
        ),
        compiler_params=pltpu.CompilerParams(
            dimension_semantics=("parallel",),
            vmem_limit_bytes=48 * 1024 * 1024),
        cost_estimate=pl.CostEstimate(
            flops=flops, transcendentals=transcendentals,
            bytes_accessed=bytes_accessed),
    )(x2d, w1p, b1p, w2p, b2p, w3p, b3p, w4p, b4p)

    # TODO(synk): on v7x the fc1 operands could be fp8 (native MXU support) to
    # halve the dominant x-read again; skipped pending an accuracy check.
    return out[:, :_N_OUT].astype(jnp.float32)


def init_params(key):
    """Deterministic parameter init (Kaiming-uniform-ish, like torch default).

    Returns weights as (in_features, out_features) == torch weight transposed.
    """
    dims = [(784, 128), (128, 64), (64, 16), (16, 10)]
    params = []
    for fan_in, fan_out in dims:
        key, kw, kb = jax.random.split(key, 3)
        bound = 1.0 / jnp.sqrt(fan_in)
        w = jax.random.uniform(kw, (fan_in, fan_out), jnp.float32,
                               minval=-bound, maxval=bound)
        b = jax.random.uniform(kb, (1, fan_out), jnp.float32,
                               minval=-bound, maxval=bound)
        params += [w, b]
    return tuple(params)


def _reference_forward(x, params):
    """Plain-JAX float32 reference matching the PyTorch forward."""
    w1, b1, w2, b2, w3, b3, w4, b4 = params
    h = x.astype(jnp.float32).reshape(-1, 784)
    h = jnp.tanh(h @ w1 + b1)
    h = jnp.tanh(h @ w2 + b2)
    h = jnp.tanh(h @ w3 + b3)
    h = h @ w4 + b4
    return jax.nn.log_softmax(h, axis=1)


if __name__ == "__main__":
    key = jax.random.PRNGKey(0)
    k_params, k_x = jax.random.split(key)

    params = init_params(k_params)
    # Small MNIST-like batch, NCHW just like the PyTorch module expects.
    x = jax.random.normal(k_x, (32, 1, 28, 28), jnp.float32)

    out = net1_forward(x, params)
    out = jax.block_until_ready(out)

    ref = _reference_forward(x, params)
    assert out.shape == (32, 10)
    assert out.dtype == jnp.float32
    # bf16 matmul streaming + bf16 output store -> compare loosely vs f32 ref.
    assert jnp.allclose(out, ref, atol=5e-2, rtol=1e-2), "mismatch vs reference"
    # log-probs must exponentiate to a proper distribution over the 10 classes
    assert jnp.allclose(jnp.sum(jnp.exp(out), axis=1), 1.0, atol=2e-2)

    print("KERNEL_OK")
</pallas_src>

<mosaic_0001>
module attributes {stable_mosaic.version = 11 : i64} {
  func.func @_mlp_kernel(%arg0: i32, %arg1: memref<32x784xf32, #tpu.memory_space<vmem>>, %arg2: memref<784x128xbf16, #tpu.memory_space<vmem>>, %arg3: memref<1x128xf32, #tpu.memory_space<vmem>>, %arg4: memref<128x128xbf16, #tpu.memory_space<vmem>>, %arg5: memref<1x128xf32, #tpu.memory_space<vmem>>, %arg6: memref<128x128xbf16, #tpu.memory_space<vmem>>, %arg7: memref<1x128xf32, #tpu.memory_space<vmem>>, %arg8: memref<128x128xbf16, #tpu.memory_space<vmem>>, %arg9: memref<1x128xf32, #tpu.memory_space<vmem>>, %arg10: memref<32x128xbf16, #tpu.memory_space<vmem>>) attributes {dimension_semantics = [#tpu.dimension_semantics<parallel>], iteration_bounds = array<i64: 1>, scalar_prefetch = 0 : i64, scratch_operands = 0 : i64, tpu.core_type = #tpu.core_type<tc>, window_params = [{transform_indices = @transform_0, window_bounds = array<i64: 32, 784>}, {pipeline_mode = #tpu.pipeline_mode<synchronous>, transform_indices = @transform_1, window_bounds = array<i64: 784, 128>}, {pipeline_mode = #tpu.pipeline_mode<synchronous>, transform_indices = @transform_2, window_bounds = array<i64: 1, 128>}, {pipeline_mode = #tpu.pipeline_mode<synchronous>, transform_indices = @transform_3, window_bounds = array<i64: 128, 128>}, {pipeline_mode = #tpu.pipeline_mode<synchronous>, transform_indices = @transform_4, window_bounds = array<i64: 1, 128>}, {pipeline_mode = #tpu.pipeline_mode<synchronous>, transform_indices = @transform_5, window_bounds = array<i64: 128, 128>}, {pipeline_mode = #tpu.pipeline_mode<synchronous>, transform_indices = @transform_6, window_bounds = array<i64: 1, 128>}, {pipeline_mode = #tpu.pipeline_mode<synchronous>, transform_indices = @transform_7, window_bounds = array<i64: 128, 128>}, {pipeline_mode = #tpu.pipeline_mode<synchronous>, transform_indices = @transform_8, window_bounds = array<i64: 1, 128>}, {transform_indices = @transform_9, window_bounds = array<i64: 32, 128>}]} {
    %c0 = arith.constant 0 : index
    %c0_0 = arith.constant 0 : index
    %0 = vector.load %arg1[%c0, %c0_0] : memref<32x784xf32, #tpu.memory_space<vmem>>, vector<32x784xf32>
    %1 = arith.truncf %0 : vector<32x784xf32> to vector<32x784xbf16>
    %c0_1 = arith.constant 0 : index
    %c0_2 = arith.constant 0 : index
    %2 = vector.load %arg2[%c0_1, %c0_2] : memref<784x128xbf16, #tpu.memory_space<vmem>>, vector<784x128xbf16>
    %cst = arith.constant dense<0.000000e+00> : vector<32x128xf32>
    %3 = tpu.matmul %1, %2, %cst {dimension_numbers = #tpu.dot_dimension_numbers<[1], [0], [0], [1], [0, 0, 1, 1], [], []>} : vector<32x784xbf16>, vector<784x128xbf16>, vector<32x128xf32> -> vector<32x128xf32>
    %c0_3 = arith.constant 0 : index
    %c0_4 = arith.constant 0 : index
    %4 = vector.load %arg3[%c0_3, %c0_4] : memref<1x128xf32, #tpu.memory_space<vmem>>, vector<1x128xf32>
    %5 = vector.broadcast %4 : vector<1x128xf32> to vector<32x128xf32>
    %6 = arith.addf %3, %5 : vector<32x128xf32>
    %7 = math.tanh %6 : vector<32x128xf32>
    %8 = arith.truncf %7 : vector<32x128xf32> to vector<32x128xbf16>
    %c0_5 = arith.constant 0 : index
    %c0_6 = arith.constant 0 : index
    %9 = vector.load %arg4[%c0_5, %c0_6] : memref<128x128xbf16, #tpu.memory_space<vmem>>, vector<128x128xbf16>
    %cst_7 = arith.constant dense<0.000000e+00> : vector<32x128xf32>
    %10 = tpu.matmul %8, %9, %cst_7 {dimension_numbers = #tpu.dot_dimension_numbers<[1], [0], [0], [1], [0, 0, 1, 1], [], []>} : vector<32x128xbf16>, vector<128x128xbf16>, vector<32x128xf32> -> vector<32x128xf32>
    %c0_8 = arith.constant 0 : index
    %c0_9 = arith.constant 0 : index
    %11 = vector.load %arg5[%c0_8, %c0_9] : memref<1x128xf32, #tpu.memory_space<vmem>>, vector<1x128xf32>
    %12 = vector.broadcast %11 : vector<1x128xf32> to vector<32x128xf32>
    %13 = arith.addf %10, %12 : vector<32x128xf32>
    %14 = math.tanh %13 : vector<32x128xf32>
    %15 = arith.truncf %14 : vector<32x128xf32> to vector<32x128xbf16>
    %c0_10 = arith.constant 0 : index
    %c0_11 = arith.constant 0 : index
    %16 = vector.load %arg6[%c0_10, %c0_11] : memref<128x128xbf16, #tpu.memory_space<vmem>>, vector<128x128xbf16>
    %cst_12 = arith.constant dense<0.000000e+00> : vector<32x128xf32>
    %17 = tpu.matmul %15, %16, %cst_12 {dimension_numbers = #tpu.dot_dimension_numbers<[1], [0], [0], [1], [0, 0, 1, 1], [], []>} : vector<32x128xbf16>, vector<128x128xbf16>, vector<32x128xf32> -> vector<32x128xf32>
    %c0_13 = arith.constant 0 : index
    %c0_14 = arith.constant 0 : index
    %18 = vector.load %arg7[%c0_13, %c0_14] : memref<1x128xf32, #tpu.memory_space<vmem>>, vector<1x128xf32>
    %19 = vector.broadcast %18 : vector<1x128xf32> to vector<32x128xf32>
    %20 = arith.addf %17, %19 : vector<32x128xf32>
    %21 = math.tanh %20 : vector<32x128xf32>
    %22 = arith.truncf %21 : vector<32x128xf32> to vector<32x128xbf16>
    %c0_15 = arith.constant 0 : index
    %c0_16 = arith.constant 0 : index
    %23 = vector.load %arg8[%c0_15, %c0_16] : memref<128x128xbf16, #tpu.memory_space<vmem>>, vector<128x128xbf16>
    %cst_17 = arith.constant dense<0.000000e+00> : vector<32x128xf32>
    %24 = tpu.matmul %22, %23, %cst_17 {dimension_numbers = #tpu.dot_dimension_numbers<[1], [0], [0], [1], [0, 0, 1, 1], [], []>} : vector<32x128xbf16>, vector<128x128xbf16>, vector<32x128xf32> -> vector<32x128xf32>
    %c0_18 = arith.constant 0 : index
    %c0_19 = arith.constant 0 : index
    %25 = vector.load %arg9[%c0_18, %c0_19] : memref<1x128xf32, #tpu.memory_space<vmem>>, vector<1x128xf32>
    %26 = vector.broadcast %25 : vector<1x128xf32> to vector<32x128xf32>
    %27 = arith.addf %24, %26 : vector<32x128xf32>
    %cst_20 = arith.constant dense<0xFF800000> : vector<32xf32>
    %28 = vector.multi_reduction <maximumf>, %27, %cst_20 [1] : vector<32x128xf32> to vector<32xf32>
    %29 = vector.shape_cast %28 : vector<32xf32> to vector<32x1xf32>
    %30 = vector.broadcast %29 : vector<32x1xf32> to vector<32x128xf32>
    %31 = arith.subf %27, %30 : vector<32x128xf32>
    %32 = math.exp %31 : vector<32x128xf32>
    %cst_21 = arith.constant dense<0.000000e+00> : vector<32xf32>
    %33 = vector.multi_reduction <add>, %32, %cst_21 [1] : vector<32x128xf32> to vector<32xf32>
    %34 = vector.shape_cast %33 : vector<32xf32> to vector<32x1xf32>
    %35 = math.log %34 : vector<32x1xf32>
    %36 = vector.broadcast %35 : vector<32x1xf32> to vector<32x128xf32>
    %37 = arith.subf %31, %36 : vector<32x128xf32>
    %38 = arith.truncf %37 : vector<32x128xf32> to vector<32x128xbf16>
    %c0_22 = arith.constant 0 : index
    %c0_23 = arith.constant 0 : index
    %39 = vector.load %arg10[%c0_22, %c0_23] : memref<32x128xbf16, #tpu.memory_space<vmem>>, vector<32x128xbf16>
    tpu.vector_store %arg10[%c0_22, %c0_23], %38 {strides = array<i32>} : memref<32x128xbf16, #tpu.memory_space<vmem>>, vector<32x128xbf16>,
    return
  }
  func.func @transform_0(%arg0: i32) -> (i32, i32) {
    %c0_i32 = arith.constant 0 : i32
    %c0_i32_0 = arith.constant 0 : i32
    return %arg0, %c0_i32 : i32, i32
  }
  func.func @transform_1(%arg0: i32) -> (i32, i32) {
    %c0_i32 = arith.constant 0 : i32
    %c0_i32_0 = arith.constant 0 : i32
    %c0_i32_1 = arith.constant 0 : i32
    return %c0_i32, %c0_i32_0 : i32, i32
  }
  func.func @transform_2(%arg0: i32) -> (i32, i32) {
    %c0_i32 = arith.constant 0 : i32
    %c0_i32_0 = arith.constant 0 : i32
    %c0_i32_1 = arith.constant 0 : i32
    return %c0_i32, %c0_i32_0 : i32, i32
  }
  func.func @transform_3(%arg0: i32) -> (i32, i32) {
    %c0_i32 = arith.constant 0 : i32
    %c0_i32_0 = arith.constant 0 : i32
    %c0_i32_1 = arith.constant 0 : i32
    return %c0_i32, %c0_i32_0 : i32, i32
  }
  func.func @transform_4(%arg0: i32) -> (i32, i32) {
    %c0_i32 = arith.constant 0 : i32
    %c0_i32_0 = arith.constant 0 : i32
    %c0_i32_1 = arith.constant 0 : i32
    return %c0_i32, %c0_i32_0 : i32, i32
  }
  func.func @transform_5(%arg0: i32) -> (i32, i32) {
    %c0_i32 = arith.constant 0 : i32
    %c0_i32_0 = arith.constant 0 : i32
    %c0_i32_1 = arith.constant 0 : i32
    return %c0_i32, %c0_i32_0 : i32, i32
  }
  func.func @transform_6(%arg0: i32) -> (i32, i32) {
    %c0_i32 = arith.constant 0 : i32
    %c0_i32_0 = arith.constant 0 : i32
    %c0_i32_1 = arith.constant 0 : i32
    return %c0_i32, %c0_i32_0 : i32, i32
  }
  func.func @transform_7(%arg0: i32) -> (i32, i32) {
    %c0_i32 = arith.constant 0 : i32
    %c0_i32_0 = arith.constant 0 : i32
    %c0_i32_1 = arith.constant 0 : i32
    return %c0_i32, %c0_i32_0 : i32, i32
  }
  func.func @transform_8(%arg0: i32) -> (i32, i32) {
    %c0_i32 = arith.constant 0 : i32
    %c0_i32_0 = arith.constant 0 : i32
    %c0_i32_1 = arith.constant 0 : i32
    return %c0_i32, %c0_i32_0 : i32, i32
  }
  func.func @transform_9(%arg0: i32) -> (i32, i32) {
    %c0_i32 = arith.constant 0 : i32
    %c0_i32_0 = arith.constant 0 : i32
    return %arg0, %c0_i32 : i32, i32
  }
}

</mosaic_0001>

<bundles_post_ra>
// kernel: net1_forward.1
= control target key start
LH: loop header
LB: loop body
LE: loop exit
PB: predicated region body
PF: predicated region fallthrough
CT: control target
= control target key end

     0   :  { %vm474_vm0 = vcmask 130048   ;;  %s1884_s1 = inlined_call_operand.vmem [shape: bf16[784,128], index: 1, kind: input, shape index: {}]   ;;  %s1885_s0 = inlined_call_operand.vmem [shape: f32[32,784], index: 0, kind: input, shape index: {}]   ;;  %s1886_s3 = inlined_call_operand.vmem [shape: bf16[128,128], index: 3, kind: input, shape index: {}]   ;;  %s1887_s5 = inlined_call_operand.vmem [shape: bf16[128,128], index: 5, kind: input, shape index: {}]   ;;  %s1888_s2 = inlined_call_operand.vmem [shape: f32[1,128], index: 2, kind: input, shape index: {}]   ;;  %s1889_s7 = inlined_call_operand.vmem [shape: bf16[128,128], index: 7, kind: input, shape index: {}]   ;;  %s1890_s4 = inlined_call_operand.vmem [shape: f32[1,128], index: 4, kind: input, shape index: {}]   ;;  %s1891_s6 = inlined_call_operand.vmem [shape: f32[1,128], index: 6, kind: input, shape index: {}]   ;;  %s1892_s8 = inlined_call_operand.vmem [shape: f32[1,128], index: 8, kind: input, shape index: {}]   ;;  %s1893_s9 = inlined_call_operand.vmem [shape: bf16[32,128], index: 9, kind: output, shape index: {}]  }
   0x1   :  { %v1400_v0 = vld [vmem:[%s1884_s1 + $0x78] sm:$0xff]   ;;  %v1404_v4 = vld [vmem:[%s1884_s1 + $0x70] sm:$0xff]   ;;  %v1408_v8 = vld [vmem:[%s1884_s1 + $0x68] sm:$0xff]  }
   0x2   :  { %v1401_v1 = vld [vmem:[%s1884_s1 + $0x38] sm:$0xff]   ;;  %1217 = vmatprep.subr.bf16.mxu0 %v1400_v0  ;;  %v1405_v5 = vld [vmem:[%s1884_s1 + $0x30] sm:$0xff]   ;;  %v1409_v9 = vld [vmem:[%s1884_s1 + $0x28] sm:$0xff]  }
   0x3   :  { %v1402_v2 = vld [vmem:[%s1884_s1 + $0xf8] sm:$0xff]   ;;  %1218 = vmatpush3.bf16.msra.mxu0 %v1401_v1  ;;  %v1406_v6 = vld [vmem:[%s1884_s1 + $0xf0] sm:$0xff]   ;;  %v1410_v10 = vld [vmem:[%s1884_s1 + $0xe8] sm:$0xff]  }
   0x4   :  { %v1403_v3 = vld [vmem:[%s1884_s1 + $0xb8] sm:$0xff]   ;;  %1245 = vmatprep.subr.bf16.mxu1 %v1402_v2  ;;  %1219 = vmatprep.subr.bf16.mxu0 %v1404_v4  ;;  %v1407_v7 = vld [vmem:[%s1884_s1 + $0xb0] sm:$0xff]   ;;  %v1411_v11 = vld [vmem:[%s1884_s1 + $0xa8] sm:$0xff]  }
   0x5   :  { %1246 = vmatpush3.bf16.msra.mxu1 %v1403_v3  ;;  %v1412_v12 = vld [vmem:[%s1884_s1 + $0x60] sm:$0xff]   ;;  %v1416_v16 = vld [vmem:[%s1884_s1 + $0x58] sm:$0xff]   ;;  %v1420_v20 = vld [vmem:[%s1884_s1 + $0x50] sm:$0xff]  }
   0x6   :  { %1247 = vmatprep.subr.bf16.mxu1 %v1406_v6  ;;  %v1413_v13 = vld [vmem:[%s1884_s1 + $0x20] sm:$0xff]   ;;  %v1417_v17 = vld [vmem:[%s1884_s1 + $0x18] sm:$0xff]   ;;  %v1421_v21 = vld [vmem:[%s1884_s1 + $0x10] sm:$0xff]  }
   0x7   :  { %1220 = vmatpush3.bf16.msra.mxu0 %v1405_v5  ;;  %v1414_v14 = vld [vmem:[%s1884_s1 + $0xe0] sm:$0xff]   ;;  %v1418_v18 = vld [vmem:[%s1884_s1 + $0xd8] sm:$0xff]   ;;  %v1422_v22 = vld [vmem:[%s1884_s1 + $0xd0] sm:$0xff]  }
   0x8   :  { %1221 = vmatprep.subr.bf16.mxu0 %v1408_v8  ;;  %v1415_v15 = vld [vmem:[%s1884_s1 + $0xa0] sm:$0xff]   ;;  %v1419_v19 = vld [vmem:[%s1884_s1 + $0x98] sm:$0xff]   ;;  %v1423_v23 = vld [vmem:[%s1884_s1 + $0x90] sm:$0xff]  }
   0x9   :  { %1248 = vmatpush3.bf16.msra.mxu1 %v1407_v7  ;;  %v1424_v24 = vld [vmem:[%s1884_s1 + $0x48] sm:$0xff]   ;;  %v1428_v28 = vld [vmem:[%s1884_s1 + $0x40] sm:$0xff]   ;;  %v40_v36 = vld [vmem:[%s1885_s0 + $0x38] sm:$0xff] }
   0xa   :  { %1249 = vmatprep.subr.bf16.mxu1 %v1410_v10  ;;  %v1425_v25 = vld [vmem:[%s1884_s1 + $0x8] sm:$0xff]   ;;  %v1429_v29 = vld [vmem:[%s1884_s1] sm:$0xff]   ;;  %v1432_v38 = vld [vmem:[%s1884_s1 + $0x178] sm:$0xff]  }
   0xb   :  { %1222 = vmatpush3.bf16.msra.mxu0 %v1409_v9  ;;  %v1426_v26 = vld [vmem:[%s1884_s1 + $0xc8] sm:$0xff]   ;;  %v1430_v30 = vld [vmem:[%s1884_s1 + $0xc0] sm:$0xff]   ;;  %v36_v39 = vld [vmem:[%s1885_s0 + $0x18] sm:$0xff] }
   0xc   :  { %1223 = vmatprep.subr.bf16.mxu0 %v1412_v12  ;;  %v1427_v27 = vld [vmem:[%s1884_s1 + $0x88] sm:$0xff]   ;;  %v41_v32 = vld [vmem:[%s1885_s0 + $0x40] sm:$0xff]  ;;  %v43_v40 = vld [vmem:[%s1885_s0 + $0x50] sm:$0xff] }
   0xd   :  { %1250 = vmatpush3.bf16.msra.mxu1 %v1411_v11  ;;  %v34_v31 = vld [vmem:[%s1885_s0 + $0x8] sm:$0xff]  ;;  %v1431_v34 = vld [vmem:[%s1884_s1 + $0x80] sm:$0xff]   ;;  %v64_v41 = vpack.c.bf16 %v43_v40, %v36_v39  ;;  %v1433_v42 = vld [vmem:[%s1884_s1 + $0x138] sm:$0xff]  }
   0xe   :  { %1251 = vmatprep.subr.bf16.mxu1 %v1414_v14  ;;  %v62_v33 = vpack.c.bf16 %v41_v32, %v34_v31  ;;  %v33_v35 = vld [vmem:[%s1885_s0] sm:$0xff]  ;;  %v35_v43 = vld [vmem:[%s1885_s0 + $0x10] sm:$0xff]  ;;  %v42_v44 = vld [vmem:[%s1885_s0 + $0x48] sm:$0xff] }
   0xf   :  { %1224 = vmatpush3.bf16.msra.mxu0 %v1413_v13  ;;  %v61_v37 = vpack.c.bf16 %v40_v36, %v33_v35  ;;  %562 = vmatprep.mubr.bf16.mxu1 %v64_v41  ;;  %v63_v45 = vpack.c.bf16 %v42_v44, %v35_v43  ;;  %v1434_v46 = vld [vmem:[%s1884_s1 + $0x170] sm:$0xff]   ;;  %v1436_v48 = vld [vmem:[%s1884_s1 + $0x168] sm:$0xff]   ;;  %v1438_v50 = vld [vmem:[%s1884_s1 + $0x160] sm:$0xff]  }
  0x10   :  { %1225 = vmatprep.subr.bf16.mxu0 %v1416_v16  ;;  %513 = vmatprep.mubr.bf16.mxu0 %v62_v33  ;;  %v1435_v47 = vld [vmem:[%s1884_s1 + $0x130] sm:$0xff]   ;;  %v1437_v49 = vld [vmem:[%s1884_s1 + $0x128] sm:$0xff]   ;;  %v1439_v51 = vld [vmem:[%s1884_s1 + $0x120] sm:$0xff]  }
  0x11   :  { %1252 = vmatpush3.bf16.msra.mxu1 %v1415_v15  ;;  %v48_v52 = vld [vmem:[%s1885_s0 + $0x78] sm:$0xff]  ;;  %v55_v53 = vld [vmem:[%s1885_s0 + $0xb0] sm:$0xff]  ;;  %v54_v57 = vld [vmem:[%s1885_s0 + $0xa8] sm:$0xff] }
  0x12   :  { %1253 = vmatprep.subr.bf16.mxu1 %v1418_v18  ;;  %v1440_v54 = vld [vmem:[%s1884_s1 + $0x158] sm:$0xff]   ;;  %v69_v55 = vpack.c.bf16 %v55_v53, %v48_v52  ;;  %v47_v56 = vld [vmem:[%s1885_s0 + $0x70] sm:$0xff]  ;;  %v50_v59 = vld [vmem:[%s1885_s0 + $0x88] sm:$0xff] }
  0x13   :  { %1226 = vmatpush3.bf16.msra.mxu0 %v1417_v17  ;;  %v68_v58 = vpack.c.bf16 %v54_v57, %v47_v56  ;;  %v57_v60 = vld [vmem:[%s1885_s0 + $0xc0] sm:$0xff]  ;;  %v56_v63 = vld [vmem:[%s1885_s0 + $0xb8] sm:$0xff]  ;;  %v1442_v2 = vld [vmem:[%s1884_s1 + $0x150] sm:$0xff]  }
  0x14   :  { %1227 = vmatprep.subr.bf16.mxu0 %v1420_v20  ;;  %v49_v61 = vld [vmem:[%s1885_s0 + $0x80] sm:$0xff]  ;;  %v71_v62 = vpack.c.bf16 %v57_v60, %v50_v59  ;;  %v1441_v1 = vld [vmem:[%s1884_s1 + $0x118] sm:$0xff]   ;;  %v1443_v4 = vld [vmem:[%s1884_s1 + $0x110] sm:$0xff]  }
  0x15   :  { %1254 = vmatpush3.bf16.msra.mxu1 %v1419_v19  ;;  %v70_v0 = vpack.c.bf16 %v56_v63, %v49_v61  ;;  %v1446_v3 = vld [vmem:[%s1884_s1 + $0x180] sm:$0xff]   ;;  %v1444_v5 = vld [vmem:[%s1884_s1 + $0x148] sm:$0xff]   ;;  %v39_v9 = vld [vmem:[%s1885_s0 + $0x30] sm:$0xff] }
  0x16   :  { %1255 = vmatprep.subr.bf16.mxu1 %v1422_v22  ;;  %v38_v6 = vld [vmem:[%s1885_s0 + $0x28] sm:$0xff]  ;;  %v45_v7 = vld [vmem:[%s1885_s0 + $0x60] sm:$0xff]  ;;  %v60_v12 = vld [vmem:[%s1885_s0 + $0xd8] sm:$0xff] }
  0x17   :  { %1228 = vmatpush3.bf16.msra.mxu0 %v1421_v21  ;;  %v66_v8 = vpack.c.bf16 %v45_v7, %v38_v6  ;;  %v46_v10 = vld [vmem:[%s1885_s0 + $0x68] sm:$0xff]  ;;  %v53_v11 = vld [vmem:[%s1885_s0 + $0xa0] sm:$0xff]  ;;  %v44_v19 = vld [vmem:[%s1885_s0 + $0x58] sm:$0xff] }
  0x18   :  { %1229 = vmatprep.subr.bf16.mxu0 %v1424_v24  ;;  %v1445_v13 = vld [vmem:[%s1884_s1 + $0x108] sm:$0xff]   ;;  %v67_v14 = vpack.c.bf16 %v46_v10, %v39_v9  ;;  %v74_v15 = vpack.c.bf16 %v60_v12, %v53_v11  ;;  %v1447_v16 = vld [vmem:[%s1884_s1 + $0x140] sm:$0xff]   ;;  %v52_v20 = vld [vmem:[%s1885_s0 + $0x98] sm:$0xff] }
  0x19   :  { %1256 = vmatpush3.bf16.msra.mxu1 %v1423_v23  ;;  %v1448_v17 = vld [vmem:[%s1884_s1 + $0x100] sm:$0xff]   ;;  %v59_v21 = vld [vmem:[%s1885_s0 + $0xd0] sm:$0xff]  ;;  %v1453_v31 = vld [vmem:[%s1886_s3 + $0x18] sm:$0xff]  }
  0x1a   :  { %1257 = vmatprep.subr.bf16.mxu1 %v1426_v26  ;;  %v37_v18 = vld [vmem:[%s1885_s0 + $0x20] sm:$0xff]  ;;  %v73_v23 = vpack.c.bf16 %v59_v21, %v52_v20  ;;  %v51_v24 = vld [vmem:[%s1885_s0 + $0x90] sm:$0xff]  ;;  %v1455_v33 = vld [vmem:[%s1886_s3 + $0x8] sm:$0xff]  }
  0x1b   :  { %1230 = vmatpush3.bf16.msra.mxu0 %v1425_v25  ;;  %v65_v22 = vpack.c.bf16 %v44_v19, %v37_v18  ;;  %v58_v25 = vld [vmem:[%s1885_s0 + $0xc8] sm:$0xff]  ;;  %v1454_v32 = vld [vmem:[%s1886_s3 + $0x10] sm:$0xff]   ;;  %v1457_v35 = vld [vmem:[%s1887_s5 + $0x38] sm:$0xff]  }
  0x1c   :  { %1231 = vmatprep.subr.bf16.mxu0 %v1428_v28  ;;  %v72_v26 = vpack.c.bf16 %v58_v25, %v51_v24  ;;  %v1450_v28 = vld [vmem:[%s1886_s3 + $0x30] sm:$0xff]   ;;  %v1119_v53 = vld [vmem:[%s1888_s2] ss:$0 sm:$0xff] }
  0x1d   :  { %1258 = vmatpush3.bf16.msra.mxu1 %v1427_v27  ;;  %v1449_v27 = vld [vmem:[%s1886_s3 + $0x38] sm:$0xff]   ;;  %v1458_v36 = vld [vmem:[%s1887_s5 + $0x30] sm:$0xff]  }
  0x1e   :  { %1259 = vmatprep.subr.bf16.mxu1 %v1430_v30  ;;  %v1452_v30 = vld [vmem:[%s1886_s3 + $0x20] sm:$0xff]  }
  0x1f   :  { %1232 = vmatpush3.bf16.msra.mxu0 %v1429_v29  ;;  %v1451_v29 = vld [vmem:[%s1886_s3 + $0x28] sm:$0xff]  }
  0x20   :  { %1273 = vmatprep.subr.bf16.mxu0 %v1432_v38 }
  0x21   :  { %1260 = vmatpush3.bf16.msra.mxu1 %v1431_v34  ;;  %v1456_v34 = vld [vmem:[%s1886_s3] sm:$0xff]  }
  0x22   :  { %514 = vmatmul.mubr.bf16.vlgmr.msra.gmra.mxu0 %v61_v37  ;;  %1334 = vmatprep.subr.bf16.mxu1 %v1446_v3 }
  0x23   :  { %1274 = vmatpush3.bf16.msra.mxu0 %v1433_v42  ;;  %521 = vmatprep.mubr.bf16.mxu0 %v69_v55 }
  0x24   :  { %563 = vmatmul.mubr.bf16.vlgmr.msra.gmra.mxu1 %v63_v45  ;;  %1275 = vmatprep.subr.bf16.mxu0 %v1434_v46 }
  0x25   :  { %570 = vmatprep.mubr.bf16.mxu1 %v71_v62  ;;  %1335 = vmatpush3.bf16.msra.mxu1 %v1446_v3 }
  0x26   :  { %1340 = vmatprep.subr.bf16.mxu1 %v1449_v27 }
  0x27   :  { %1276 = vmatpush3.bf16.msra.mxu0 %v1435_v47 }
  0x28   :  { %1277 = vmatprep.subr.bf16.mxu0 %v1436_v48 }
  0x2a   :  { %522 = vmatmul.mubr.bf16.gmra.mxu0 %v68_v58 }
  0x2b   :  { %1278 = vmatpush3.bf16.msra.mxu0 %v1437_v49  ;;  %611 = vmatprep.mubr.bf16.mxu0 %v66_v8 }
  0x2c   :  { %1279 = vmatprep.subr.bf16.mxu0 %v1438_v50  ;;  %571 = vmatmul.mubr.bf16.gmra.mxu1 %v70_v0 }
  0x2d   :  { %1336 = vmatprep.mubr.msk.bf16.mxu1 %vm474_vm0, %v67_v14 }
  0x2f   :  { %1280 = vmatpush3.bf16.msra.mxu0 %v1439_v51 }
  0x30   :  { %1281 = vmatprep.subr.bf16.mxu0 %v1440_v54 }
  0x33   :  { %1282 = vmatpush3.bf16.msra.mxu0 %v1441_v1 }
  0x34   :  { %1283 = vmatprep.subr.bf16.mxu0 %v1442_v2  ;;  %1337 = vmatmul.mubr.msk.bf16.vlgmr.msra.gmra.mxu1 %vm474_vm0, %v74_v15 }
  0x35   :  { %1341 = vmatpush3.bf16.msra.mxu1 %v1449_v27 }
  0x36   :  { %1342 = vmatprep.subr.bf16.mxu1 %v1450_v28 }
  0x37   :  { %1284 = vmatpush3.bf16.msra.mxu0 %v1443_v4 }
  0x38   :  { %1285 = vmatprep.subr.bf16.mxu0 %v1444_v5 }
  0x39   :  { %1343 = vmatpush3.bf16.msra.mxu1 %v1450_v28 }
  0x3a   :  { %1344 = vmatprep.subr.bf16.mxu1 %v1451_v29 }
  0x3b   :  { %1286 = vmatpush3.bf16.msra.mxu0 %v1445_v13 }
  0x3c   :  { %1287 = vmatprep.subr.bf16.mxu0 %v1447_v16 }
  0x3d   :  { %1345 = vmatpush3.bf16.msra.mxu1 %v1451_v29 }
  0x3e   :  { %1346 = vmatprep.subr.bf16.mxu1 %v1452_v30 }
  0x3f   :  { %1288 = vmatpush3.bf16.msra.mxu0 %v1448_v17 }
  0x40   :  { %1360 = vmatprep.subr.bf16.mxu0 %v1457_v35 }
  0x41   :  { %1347 = vmatpush3.bf16.msra.mxu1 %v1452_v30 }
  0x42   :  { %612 = vmatmul.mubr.bf16.vlgmr.msra.gmra.mxu0 %v65_v22  ;;  %1348 = vmatprep.subr.bf16.mxu1 %v1453_v31 }
  0x43   :  { %619 = vmatprep.mubr.bf16.mxu0 %v73_v23  ;;  %1361 = vmatpush3.bf16.msra.mxu0 %v1457_v35 }
  0x44   :  { %1362 = vmatprep.subr.bf16.mxu0 %v1458_v36 }
  0x45   :  { %1349 = vmatpush3.bf16.msra.mxu1 %v1453_v31 }
  0x46   :  { %1350 = vmatprep.subr.bf16.mxu1 %v1454_v32 }
  0x47   :  { %1363 = vmatpush3.bf16.msra.mxu0 %v1458_v36  ;;  %v1459_v36 = vld [vmem:[%s1887_s5 + $0x28] sm:$0xff]  }
  0x48   :  { %1364 = vmatprep.subr.bf16.mxu0 %v1459_v36 }
  0x49   :  { %1351 = vmatpush3.bf16.msra.mxu1 %v1454_v32 }
  0x4a   :  { %620 = vmatmul.mubr.bf16.gmra.mxu0 %v72_v26  ;;  %1352 = vmatprep.subr.bf16.mxu1 %v1455_v33 }
  0x4b   :  { %1365 = vmatpush3.bf16.msra.mxu0 %v1459_v36 }
  0x4d   :  { %1353 = vmatpush3.bf16.msra.mxu1 %v1455_v33 }
  0x4e   :  { %1354 = vmatprep.subr.bf16.mxu1 %v1456_v34 }
  0x51   :  { %1355 = vmatpush3.bf16.msra.mxu1 %v1456_v34 }
  0xe2   :  { %v1233_v38 = vpop.f32.mrf.mxu0 }
  0xe4   :  { %v1261_v37 = vpop.f32.mrf.mxu1  ;;  %v1234_v40 = vpop.f32.mrf.mxu0 }
  0xe5   :  { %v1235_v52 = vadd.f32 %v1234_v40, %v1233_v38  ;;  %v1461_v38 = vld [vmem:[%s1887_s5 + $0x18] sm:$0xff]   ;;  %v1463_v40 = vld [vmem:[%s1887_s5 + $0x8] sm:$0xff]  }
  0xe6   :  { %v1262_v39 = vpop.f32.mrf.mxu1  ;;  %v1236_v42 = vpop.f32.mrf.mxu0 }
  0xe7   :  { %v516_v56 = vadd.f32 %v1235_v52, %v1119_v53  ;;  %v1263_v57 = vadd.f32 %v1262_v39, %v1261_v37  ;;  %v1460_v37 = vld [vmem:[%s1887_s5 + $0x20] sm:$0xff]   ;;  %v1462_v39 = vld [vmem:[%s1887_s5 + $0x10] sm:$0xff]  }
  0xe8   :  { %v1264_v41 = vpop.f32.mrf.mxu1  ;;  %v1237_v45 = vpop.f32.mrf.mxu0  ;;  %1366 = vmatprep.subr.bf16.mxu0 %v1460_v37 }
  0xe9   :  { %v1238_v58 = vadd.f32 %v1237_v45, %v1236_v42  ;;  %v565_v63 = vadd.f32 %v1263_v57, %v516_v56  ;;  %1367 = vmatpush3.bf16.msra.mxu0 %v1460_v37  ;;  %v1465_v42 = vld [vmem:[%s1889_s7 + $0x38] sm:$0xff]   ;;  %v1171_v45 = vld [vmem:[%s1890_s4] ss:$0 sm:$0xff] }
  0xea   :  { %v1265_v43 = vpop.f32.mrf.mxu1  ;;  %v1239_v46 = vpop.f32.mrf.mxu0  ;;  %1368 = vmatprep.subr.bf16.mxu0 %v1461_v38  ;;  %1380 = vmatprep.subr.bf16.mxu1 %v1465_v42 }
  0xeb   :  { %v519_v0 = vadd.f32 %v1238_v58, %v1119_v53  ;;  %v1266_v1 = vadd.f32 %v1265_v43, %v1264_v41  ;;  %v1464_v41 = vld [vmem:[%s1887_s5] sm:$0xff]   ;;  %v1466_v43 = vld [vmem:[%s1889_s7 + $0x30] sm:$0xff]  }
  0xec   :  { %v1267_v44 = vpop.f32.mrf.mxu1  ;;  %v1240_v48 = vpop.f32.mrf.mxu0 }
  0xed   :  { %v1241_v61 = vadd.f32 %v1240_v48, %v1239_v46  ;;  %v568_v9 = vadd.f32 %v1266_v1, %v519_v0  ;;  %1369 = vmatpush3.bf16.msra.mxu0 %v1461_v38  ;;  %v1472_v0 = vld [vmem:[%s1889_s7] sm:$0xff]  }
  0xee   :  { %v1268_v47 = vpop.f32.mrf.mxu1  ;;  %v1242_v50 = vpop.f32.mrf.mxu0  ;;  %1370 = vmatprep.subr.bf16.mxu0 %v1462_v39 }
  0xef   :  { %v524_v6 = vadd.f32 %v1241_v61, %v1119_v53  ;;  %v1269_v7 = vadd.f32 %v1268_v47, %v1267_v44  ;;  %v1469_v61 = vld [vmem:[%s1889_s7 + $0x18] sm:$0xff]  }
  0xf0   :  { %v1270_v49 = vpop.f32.mrf.mxu1  ;;  %v1243_v55 = vpop.f32.mrf.mxu0 }
  0xf1   :  { %v1244_v10 = vadd.f32 %v1243_v55, %v1242_v50  ;;  %v573_v16 = vadd.f32 %v1269_v7, %v524_v6  ;;  %1371 = vmatpush3.bf16.msra.mxu0 %v1462_v39 }
  0xf2   :  { %v1271_v51 = vpop.f32.mrf.mxu1  ;;  %1372 = vmatprep.subr.bf16.mxu0 %v1463_v40 }
  0xf3   :  { %v527_v18 = vadd.f32 %v1244_v10, %v1119_v53  ;;  %v1272_v19 = vadd.f32 %v1271_v51, %v1270_v49 }
  0xf4   :  { %v1338_v54 = vpop.f32.mrf.mxu1 }
  0xf5   :  { %v576_v25 = vadd.f32 %v1272_v19, %v527_v18  ;;  %1373 = vmatpush3.bf16.msra.mxu0 %v1463_v40 }
  0xf6   :  { %v662_v60 = vpop.f32.mrf.mxu1  ;;  %1374 = vmatprep.subr.bf16.mxu0 %v1464_v41 }
  0xf8   :  { %v1339_v4 = vpop.f32.mrf.mxu1 }
  0xf9   :  { %1375 = vmatpush3.bf16.msra.mxu0 %v1464_v41 }
  0xfa   :  { %v665_v14 = vpop.f32.mrf.mxu1 }
 0x102   :  { %v1289_v59 = vpop.f32.mrf.mxu0 }
 0x104   :  { %v1290_v62 = vpop.f32.mrf.mxu0 }
 0x105   :  { %v1291_v2 = vadd.f32 %v1290_v62, %v1289_v59  ;;  %v1467_v59 = vld [vmem:[%s1889_s7 + $0x28] sm:$0xff]   ;;  %v1470_v62 = vld [vmem:[%s1889_s7 + $0x10] sm:$0xff]  }
 0x106   :  { %v1292_v3 = vpop.f32.mrf.mxu0 }
 0x107   :  { %v614_v5 = vadd.f32 %v1291_v2, %v565_v63  ;;  %v1471_v63 = vld [vmem:[%s1889_s7 + $0x8] sm:$0xff]   ;;  %v1180_v2 = vld [vmem:[%s1891_s6] ss:$0 sm:$0xff] }
 0x108   :  { %v1293_v8 = vpop.f32.mrf.mxu0 }
 0x109   :  { %v1294_v11 = vadd.f32 %v1293_v8, %v1292_v3  ;;  %v663_v12 = vadd.f32 %v662_v60, %v614_v5  ;;  %v1468_v60 = vld [vmem:[%s1889_s7 + $0x20] sm:$0xff]  }
 0x10a   :  { %v1295_v13 = vpop.f32.mrf.mxu0 }
 0x10b   :  { %v617_v15 = vadd.f32 %v1294_v11, %v568_v9  ;;  %1473 = vtanh.f32 %v663_v12 }
 0x10c   :  { %v1296_v17 = vpop.f32.mrf.mxu0 }
 0x10d   :  { %v1297_v20 = vadd.f32 %v1296_v17, %v1295_v13  ;;  %v666_v21 = vadd.f32 %v665_v14, %v617_v15 }
 0x10e   :  { %v1298_v22 = vpop.f32.mrf.mxu0 }
 0x10f   :  { %v622_v23 = vadd.f32 %v1297_v20, %v573_v16  ;;  %1475 = vtanh.f32 %v666_v21  ;;  %v1189_v16 = vld [vmem:[%s1892_s8] ss:$0 sm:$0xff] }
 0x110   :  { %v1299_v24 = vpop.f32.mrf.mxu0 }
 0x111   :  { %v1300_v26 = vadd.f32 %v1299_v24, %v1298_v22  ;;  %v671_v27 = vadd.f32 %v1338_v54, %v622_v23 }
 0x113   :  { %v625_v28 = vadd.f32 %v1300_v26, %v576_v25  ;;  %1477 = vtanh.f32 %v671_v27 }
 0x115   :  { %v674_v29 = vadd.f32 %v1339_v4, %v625_v28 }
 0x117   :  { %1479 = vtanh.f32 %v674_v29 }
 0x118   :  { %v1474_v30 = vpop.eup %1473 }
 0x11c   :  { %v1476_v31 = vpop.eup %1475 }
 0x11d   :  { %v681_v32 = vpack.c.bf16 %v1476_v31, %v1474_v30 }
 0x11f   :  { %1356 = vmatprep.mubr.bf16.mxu1 %v681_v32 }
 0x120   :  { %v1478_v33 = vpop.eup %1477 }
 0x124   :  { %v1480_v34 = vpop.eup %1479 }
 0x125   :  { %v682_v35 = vpack.c.bf16 %v1480_v34, %v1478_v33 }
 0x127   :  { %1357 = vmatmul.mubr.bf16.vlgmr.msra.gmra.mxu1 %v682_v35 }
 0x128   :  { %1381 = vmatpush3.bf16.msra.mxu1 %v1465_v42 }
 0x129   :  { %1382 = vmatprep.subr.bf16.mxu1 %v1466_v43 }
 0x12c   :  { %1383 = vmatpush3.bf16.msra.mxu1 %v1466_v43 }
 0x12d   :  { %1384 = vmatprep.subr.bf16.mxu1 %v1467_v59 }
 0x130   :  { %1385 = vmatpush3.bf16.msra.mxu1 %v1467_v59 }
 0x131   :  { %1386 = vmatprep.subr.bf16.mxu1 %v1468_v60 }
 0x134   :  { %1387 = vmatpush3.bf16.msra.mxu1 %v1468_v60 }
 0x135   :  { %1388 = vmatprep.subr.bf16.mxu1 %v1469_v61 }
 0x138   :  { %1389 = vmatpush3.bf16.msra.mxu1 %v1469_v61 }
 0x139   :  { %1390 = vmatprep.subr.bf16.mxu1 %v1470_v62 }
 0x13c   :  { %1391 = vmatpush3.bf16.msra.mxu1 %v1470_v62 }
 0x13d   :  { %1392 = vmatprep.subr.bf16.mxu1 %v1471_v63 }
 0x140   :  { %1393 = vmatpush3.bf16.msra.mxu1 %v1471_v63 }
 0x141   :  { %1394 = vmatprep.subr.bf16.mxu1 %v1472_v0 }
 0x144   :  { %1395 = vmatpush3.bf16.msra.mxu1 %v1472_v0 }
 0x1e7   :  { %v1358_v44 = vpop.f32.mrf.mxu1 }
 0x1e8   :  { %v797_v50 = vadd.f32 %v1358_v44, %v1171_v45 }
 0x1e9   :  { %v788_v46 = vpop.f32.mrf.mxu1 }
 0x1ea   :  { %v789_v47 = vadd.f32 %v1171_v45, %v788_v46 }
 0x1eb   :  { %v1359_v48 = vpop.f32.mrf.mxu1 }
 0x1ec   :  { %v800_v49 = vadd.f32 %v1359_v48, %v1171_v45  ;;  %1481 = vtanh.f32 %v789_v47 }
 0x1ed   :  { %v791_v51 = vpop.f32.mrf.mxu1 }
 0x1ee   :  { %v792_v52 = vadd.f32 %v1171_v45, %v791_v51  ;;  %1483 = vtanh.f32 %v800_v49 }
 0x1f0   :  { %1485 = vtanh.f32 %v792_v52 }
 0x1f1   :  { %1487 = vtanh.f32 %v797_v50 }
 0x1f9   :  { %v1482_v53 = vpop.eup %1481 }
 0x1fb   :  { %v1484_v54 = vpop.eup %1483 }
 0x1fd   :  { %v1486_v55 = vpop.eup %1485 }
 0x1fe   :  { %v1488_v56 = vpop.eup %1487  ;;  %v807_v57 = vpack.c.bf16 %v1486_v55, %v1482_v53 }
 0x1ff   :  { %v808_v58 = vpack.c.bf16 %v1484_v54, %v1488_v56 }
 0x200   :  { %1376 = vmatprep.mubr.bf16.mxu0 %v807_v57 }
 0x201   :  { %1377 = vmatmul.mubr.bf16.vlgmr.msra.gmra.mxu0 %v808_v58 }
 0x2c1   :  { %v1378_v1 = vpop.f32.mrf.mxu0 }
 0x2c2   :  { %v923_v7 = vadd.f32 %v1378_v1, %v1180_v2 }
 0x2c3   :  { %v914_v3 = vpop.f32.mrf.mxu0 }
 0x2c4   :  { %v915_v4 = vadd.f32 %v1180_v2, %v914_v3 }
 0x2c5   :  { %v1379_v5 = vpop.f32.mrf.mxu0 }
 0x2c6   :  { %v926_v6 = vadd.f32 %v1379_v5, %v1180_v2  ;;  %1489 = vtanh.f32 %v915_v4 }
 0x2c7   :  { %v917_v8 = vpop.f32.mrf.mxu0 }
 0x2c8   :  { %v918_v9 = vadd.f32 %v1180_v2, %v917_v8  ;;  %1491 = vtanh.f32 %v926_v6 }
 0x2ca   :  { %1493 = vtanh.f32 %v918_v9 }
 0x2cb   :  { %1495 = vtanh.f32 %v923_v7 }
 0x2d3   :  { %v1490_v10 = vpop.eup %1489 }
 0x2d5   :  { %v1492_v11 = vpop.eup %1491 }
 0x2d7   :  { %v1494_v12 = vpop.eup %1493 }
 0x2d8   :  { %v1496_v13 = vpop.eup %1495  ;;  %v933_v14 = vpack.c.bf16 %v1494_v12, %v1490_v10 }
 0x2d9   :  { %v934_v15 = vpack.c.bf16 %v1492_v11, %v1496_v13 }
 0x2da   :  { %1396 = vmatprep.mubr.bf16.mxu1 %v933_v14 }
 0x2db   :  { %1397 = vmatmul.mubr.bf16.vlgmr.msra.gmra.mxu1 %v934_v15 }
 0x39b   :  { %v1398_v17 = vpop.f32.mrf.mxu1 }
 0x39c   :  { %v1049_v18 = vadd.f32 %v1398_v17, %v1189_v16 }
 0x39d   :  { %v1040_v19 = vpop.f32.mrf.mxu1 }
 0x39e   :  { %v1041_v20 = vadd.f32 %v1189_v16, %v1040_v19  ;;  %1059 = vmax.xlane.f32.xlu1 %v1049_v18 }
 0x39f   :  { %v1399_v21 = vpop.f32.mrf.mxu1 }
 0x3a0   :  { %v1052_v22 = vadd.f32 %v1399_v21, %v1189_v16  ;;  %1055 = vmax.xlane.f32.xlu0 %v1041_v20 }
 0x3a1   :  { %v1043_v23 = vpop.f32.mrf.mxu1 }
 0x3a2   :  { %v1044_v24 = vadd.f32 %v1189_v16, %v1043_v23  ;;  %1061 = vmax.xlane.f32.xlu1 %v1052_v22 }
 0x3a4   :  { %1057 = vmax.xlane.f32.xlu0 %v1044_v24 }
 0x427   :  { %v1060_v25 = vpop.xlane.xlu1 %1059 }
 0x428   :  { %v1065_v26 = vsub.f32 %v1049_v18, %v1060_v25 }
 0x429   :  { %v1056_v27 = vpop.xlane.xlu0 %1055 }
 0x42a   :  { %v1063_v28 = vsub.f32 %v1041_v20, %v1056_v27  ;;  %v1071_v31 = vmul.f32 1.442695, %v1065_v26 }
 0x42b   :  { %v1062_v29 = vpop.xlane.xlu1 %1061 }
 0x42c   :  { %v1067_v30 = vmul.f32 1.442695, %v1063_v28  ;;  %v1066_v33 = vsub.f32 %v1052_v22, %v1062_v29 }
 0x42d   :  { %v1058_v32 = vpop.xlane.xlu0 %1057 }
 0x42e   :  { %1497 = vpow2.f32 %v1067_v30  ;;  %v1064_v34 = vsub.f32 %v1044_v24, %v1058_v32  ;;  %v1073_v36 = vmul.f32 1.442695, %v1066_v33 }
 0x42f   :  { %1499 = vpow2.f32 %v1071_v31 }
 0x430   :  { %v1069_v35 = vmul.f32 1.442695, %v1064_v34 }
 0x432   :  { %1501 = vpow2.f32 %v1069_v35 }
 0x433   :  { %1503 = vpow2.f32 %v1073_v36 }
 0x43b   :  { %v1498_v37 = vpop.eup %1497 }
 0x43c   :  { %1075 = vadd.xlane.f32.xlu0 %v1498_v37  ;;  %v1500_v38 = vpop.eup %1499 }
 0x43f   :  { %v1502_v39 = vpop.eup %1501 }
 0x440   :  { %1079 = vadd.xlane.f32.xlu0 %v1500_v38  ;;  %1077 = vadd.xlane.f32.xlu1 %v1502_v39  ;;  %v1504_v40 = vpop.eup %1503 }
 0x444   :  { %1081 = vadd.xlane.f32.xlu1 %v1504_v40 }
 0x4c5   :  { %v1076_v41 = vpop.xlane.xlu0 %1075 }
 0x4c6   :  { %1505 = vlog2.f32 %v1076_v41 }
 0x4c9   :  { %v1078_v42 = vpop.xlane.xlu1 %1077  ;;  %v1080_v43 = vpop.xlane.xlu0 %1079 }
 0x4ca   :  { %1507 = vlog2.f32 %v1078_v42 }
 0x4cb   :  { %1509 = vlog2.f32 %v1080_v43 }
 0x4cd   :  { %v1082_v44 = vpop.xlane.xlu1 %1081 }
 0x4ce   :  { %1511 = vlog2.f32 %v1082_v44 }
 0x4d3   :  { %v1506_v45 = vpop.eup %1505 }
 0x4d4   :  { %v1084_v46 = vmul.f32 0.6931472, %v1506_v45 }
 0x4d6   :  { %v1091_v50 = vsub.f32 %v1063_v28, %v1084_v46 }
 0x4d7   :  { %v1508_v47 = vpop.eup %1507 }
 0x4d8   :  { %v1510_v48 = vpop.eup %1509  ;;  %v1086_v49 = vmul.f32 0.6931472, %v1508_v47 }
 0x4d9   :  { %v1088_v52 = vmul.f32 0.6931472, %v1510_v48 }
 0x4da   :  { %v1092_v51 = vsub.f32 %v1064_v34, %v1086_v49 }
 0x4db   :  { %v1512_v53 = vpop.eup %1511  ;;  %v1093_v56 = vsub.f32 %v1065_v26, %v1088_v52 }
 0x4dc   :  { %v1209_v54 = vpack.c.bf16 %v1092_v51, %v1091_v50  ;;  %v1090_v55 = vmul.f32 0.6931472, %v1512_v53 }
 0x4de   :  { %1210 = vst [vmem:[%s1893_s9] sm:$0xff] %v1209_v54   ;;  %v1094_v57 = vsub.f32 %v1066_v33, %v1090_v55 }
 0x4e0   :  { %v1214_v58 = vpack.c.bf16 %v1094_v57, %v1093_v56 }
 0x4e2   :  { %1216 = vst [vmem:[%s1893_s9 + $0x8] sm:$0xff] %v1214_v58  }

</bundles_post_ra>
